<compile_context>
chip_gen: v6e
topology: v6e:2x2x1
jax: 0.10.0
libtpu: 0.0.40
codegen_flags: <defaults>
</compile_context>

<pallas_src>
import functools

import jax
import jax.numpy as jnp
from jax import lax
from jax.experimental import pallas as pl
from jax.experimental.pallas import tpu as pltpu


def _fused_kernel(p_ref, wenc_ref, benc_ref, wdec_ref, bdec_ref, out_ref):
    """Fused encoder(im2col matmul + bias + ReLU) + concatenated 1x1 decoders.

    p_ref    : (K, Mt)      im2col patch matrix tile, K = 9*C_in, Mt = column tile of N*H*W
    wenc_ref : (C_hid, K)   encoder weights, reshaped for a single contraction
    benc_ref : (C_hid, 1)   encoder bias
    wdec_ref : (C_pad, C_hid) all decoder weights concatenated (rows padded to multiple of 8)
    bdec_ref : (C_pad, 1)   concatenated decoder biases
    out_ref  : (C_pad, Mt)  concatenated task outputs (lane-dense columns)
    """
    hidden = jnp.dot(wenc_ref[...], p_ref[...], preferred_element_type=jnp.float32)
    hidden = jnp.maximum(hidden + benc_ref[...], 0.0)          # ReLU, (C_hid, Mt)
    out = jnp.dot(wdec_ref[...], hidden, preferred_element_type=jnp.float32) + bdec_ref[...]
    out_ref[...] = out.astype(out_ref.dtype)


def _pick_col_tile(m_total, target=4096):
    """Largest multiple-of-128 column tile <= target that divides M (else whole M)."""
    if m_total <= target:
        return m_total
    t = (target // 128) * 128
    while t >= 128:
        if m_total % t == 0:
            return t
        t -= 128
    return m_total


def _fused_forward(p, w_enc2, b_enc2, w_dec_cat, b_dec_cat):
    """p: (K, M) -> (C_pad, M), single fused pallas_call."""
    K, M = p.shape
    C_hid = w_enc2.shape[0]
    C_pad = w_dec_cat.shape[0]
    m_tile = _pick_col_tile(M)
    grid = (M // m_tile,)

    return pl.pallas_call(
        _fused_kernel,
        out_shape=jax.ShapeDtypeStruct((C_pad, M), jnp.float32),
        grid_spec=pltpu.PrefetchScalarGridSpec(
            num_scalar_prefetch=0,
            grid=grid,
            in_specs=[
                pl.BlockSpec((K, m_tile), lambda j: (0, j)),        # patch columns tiled
                pl.BlockSpec((C_hid, K), lambda j: (0, 0)),         # encoder weight (resident)
                pl.BlockSpec((C_hid, 1), lambda j: (0, 0)),         # encoder bias
                pl.BlockSpec((C_pad, C_hid), lambda j: (0, 0)),     # fused decoder weight
                pl.BlockSpec((C_pad, 1), lambda j: (0, 0)),         # fused decoder bias
            ],
            out_specs=pl.BlockSpec((C_pad, m_tile), lambda j: (0, j)),
        ),
        compiler_params=pltpu.CompilerParams(dimension_semantics=("parallel",)),
    )(p, w_enc2, b_enc2, w_dec_cat, b_dec_cat)


def multi_decoder_backbone(x_nchw, params):
    """Reproduces MultiDecoderBackbone.forward: returns a list of per-task outputs (NCHW)."""
    x = x_nchw.astype(jnp.float32)
    N, C_in, H, W = x.shape
    w_enc, b_enc = params["encoder"]            # (3, 3, C_in, C_hid), (1, C_hid)
    C_hid = w_enc.shape[-1]
    K = 9 * C_in
    M = N * H * W

    # --- im2col (done ONCE, tiny tensors): rows ordered (kh, kw, c_in), cols ordered (n, h, w)
    xpad = jnp.pad(x, ((0, 0), (0, 0), (1, 1), (1, 1)))
    patches = [xpad[:, :, kh:kh + H, kw:kw + W] for kh in range(3) for kw in range(3)]
    p = jnp.stack(patches, axis=0)                              # (9, N, C_in, H, W)
    p = jnp.transpose(p, (0, 2, 1, 3, 4)).reshape(K, M)         # (9*C_in, N*H*W)

    # --- encoder weight/bias in matmul form
    w_enc2 = jnp.transpose(w_enc.reshape(K, C_hid))             # (C_hid, 9*C_in)
    b_enc2 = b_enc.reshape(C_hid, 1)                            # (C_hid, 1)

    # --- concatenate all decoders into one weight/bias (rows padded to multiple of 8)
    c_outs = [wd.shape[-1] for wd, _ in params["decoders"]]
    C_tot = sum(c_outs)
    w_dec_cat = jnp.concatenate(
        [jnp.transpose(wd) for wd, _ in params["decoders"]], axis=0)   # (C_tot, C_hid)
    b_dec_cat = jnp.concatenate(
        [bd.reshape(-1, 1) for _, bd in params["decoders"]], axis=0)   # (C_tot, 1)
    C_pad = ((C_tot + 7) // 8) * 8
    if C_pad != C_tot:
        w_dec_cat = jnp.pad(w_dec_cat, ((0, C_pad - C_tot), (0, 0)))
        b_dec_cat = jnp.pad(b_dec_cat, ((0, C_pad - C_tot), (0, 0)))

    # --- one fused kernel launch for encoder + all decoders, all batch elements
    out_full = _fused_forward(p, w_enc2, b_enc2, w_dec_cat, b_dec_cat)  # (C_pad, N*H*W)
    out_full = out_full[:C_tot].reshape(C_tot, N, H, W)

    # --- split the concatenated channel axis back into per-task NCHW outputs (tiny slices)
    outs = []
    off = 0
    for c in c_outs:
        outs.append(jnp.transpose(out_full[off:off + c], (1, 0, 2, 3)))  # (N, c, H, W)
        off += c
    return outs


def _reference(x_nchw, params):
    """Pure-JAX reference (lax conv) for correctness check."""
    x_nhwc = jnp.transpose(x_nchw, (0, 2, 3, 1)).astype(jnp.float32)
    w_enc, b_enc = params["encoder"]
    h = lax.conv_general_dilated(
        x_nhwc, w_enc, window_strides=(1, 1), padding="SAME",
        dimension_numbers=("NHWC", "HWIO", "NHWC"))
    h = jnp.maximum(h + b_enc[0], 0.0)
    outs = []
    for (w_dec, b_dec) in params["decoders"]:
        y = jnp.einsum("nhwc,cd->nhwd", h, w_dec) + b_dec[0]
        outs.append(jnp.transpose(y, (0, 3, 1, 2)))
    return outs


def make_params(key, c_in, c_hid, task_out_channels):
    keys = jax.random.split(key, 2 + 2 * len(task_out_channels))
    w_enc = 0.1 * jax.random.normal(keys[0], (3, 3, c_in, c_hid), jnp.float32)
    b_enc = 0.1 * jax.random.normal(keys[1], (1, c_hid), jnp.float32)
    decoders = []
    for i, c_out in enumerate(task_out_channels):
        w_dec = 0.1 * jax.random.normal(keys[2 + 2 * i], (c_hid, c_out), jnp.float32)
        b_dec = 0.1 * jax.random.normal(keys[3 + 2 * i], (1, c_out), jnp.float32)
        decoders.append((w_dec, b_dec))
    return {"encoder": (w_enc, b_enc), "decoders": decoders}


if __name__ == "__main__":
    key = jax.random.PRNGKey(0)
    k_x, k_p = jax.random.split(key)

    N, C_in, H, W = 2, 4, 16, 16
    C_hid = 8
    tasks = ["semseg", "depth", "normals"]
    task_out_channels = [3, 1, 2]

    x = jax.random.normal(k_x, (N, C_in, H, W), jnp.float32)   # NCHW, like the PyTorch module
    params = make_params(k_p, C_in, C_hid, task_out_channels)

    outs = multi_decoder_backbone(x, params)
    outs = [jax.block_until_ready(o) for o in outs]

    refs = _reference(x, params)
    for name, o, r, c_out in zip(tasks, outs, refs, task_out_channels):
        assert o.shape == (N, c_out, H, W), (name, o.shape)
        assert jnp.allclose(o, r, atol=1e-4, rtol=1e-4), f"mismatch in task {name}"

    print("KERNEL_OK")
</pallas_src>

<mosaic_0001>
module attributes {stable_mosaic.version = 11 : i64} {
  func.func @_fused_kernel(%arg0: i32, %arg1: memref<36x512xf32, #tpu.memory_space<vmem>>, %arg2: memref<8x36xf32, #tpu.memory_space<vmem>>, %arg3: memref<8x1xf32, #tpu.memory_space<vmem>>, %arg4: memref<8x8xf32, #tpu.memory_space<vmem>>, %arg5: memref<8x1xf32, #tpu.memory_space<vmem>>, %arg6: memref<8x512xf32, #tpu.memory_space<vmem>>) attributes {dimension_semantics = [#tpu.dimension_semantics<parallel>], iteration_bounds = array<i64: 1>, scalar_prefetch = 0 : i64, scratch_operands = 0 : i64, tpu.core_type = #tpu.core_type<tc>, window_params = [{transform_indices = @transform_0, window_bounds = array<i64: 36, 512>}, {pipeline_mode = #tpu.pipeline_mode<synchronous>, transform_indices = @transform_1, window_bounds = array<i64: 8, 36>}, {pipeline_mode = #tpu.pipeline_mode<synchronous>, transform_indices = @transform_2, window_bounds = array<i64: 8, 1>}, {pipeline_mode = #tpu.pipeline_mode<synchronous>, transform_indices = @transform_3, window_bounds = array<i64: 8, 8>}, {pipeline_mode = #tpu.pipeline_mode<synchronous>, transform_indices = @transform_4, window_bounds = array<i64: 8, 1>}, {transform_indices = @transform_5, window_bounds = array<i64: 8, 512>}]} {
    %c0 = arith.constant 0 : index
    %c0_0 = arith.constant 0 : index
    %0 = vector.load %arg2[%c0, %c0_0] : memref<8x36xf32, #tpu.memory_space<vmem>>, vector<8x36xf32>
    %c0_1 = arith.constant 0 : index
    %c0_2 = arith.constant 0 : index
    %1 = vector.load %arg1[%c0_1, %c0_2] : memref<36x512xf32, #tpu.memory_space<vmem>>, vector<36x512xf32>
    %cst = arith.constant dense<0.000000e+00> : vector<8x512xf32>
    %2 = tpu.matmul %0, %1, %cst {dimension_numbers = #tpu.dot_dimension_numbers<[1], [0], [0], [1], [0, 0, 1, 1], [], []>} : vector<8x36xf32>, vector<36x512xf32>, vector<8x512xf32> -> vector<8x512xf32>
    %c0_3 = arith.constant 0 : index
    %c0_4 = arith.constant 0 : index
    %3 = vector.load %arg3[%c0_3, %c0_4] : memref<8x1xf32, #tpu.memory_space<vmem>>, vector<8x1xf32>
    %4 = vector.broadcast %3 : vector<8x1xf32> to vector<8x512xf32>
    %5 = arith.addf %2, %4 : vector<8x512xf32>
    %cst_5 = arith.constant 0.000000e+00 : f32
    %6 = vector.broadcast %cst_5 : f32 to vector<8x512xf32>
    %7 = arith.maximumf %5, %6 : vector<8x512xf32>
    %c0_6 = arith.constant 0 : index
    %c0_7 = arith.constant 0 : index
    %8 = vector.load %arg4[%c0_6, %c0_7] : memref<8x8xf32, #tpu.memory_space<vmem>>, vector<8x8xf32>
    %cst_8 = arith.constant dense<0.000000e+00> : vector<8x512xf32>
    %9 = tpu.matmul %8, %7, %cst_8 {dimension_numbers = #tpu.dot_dimension_numbers<[1], [0], [0], [1], [0, 0, 1, 1], [], []>} : vector<8x8xf32>, vector<8x512xf32>, vector<8x512xf32> -> vector<8x512xf32>
    %c0_9 = arith.constant 0 : index
    %c0_10 = arith.constant 0 : index
    %10 = vector.load %arg5[%c0_9, %c0_10] : memref<8x1xf32, #tpu.memory_space<vmem>>, vector<8x1xf32>
    %11 = vector.broadcast %10 : vector<8x1xf32> to vector<8x512xf32>
    %12 = arith.addf %9, %11 : vector<8x512xf32>
    %c0_11 = arith.constant 0 : index
    %c0_12 = arith.constant 0 : index
    %13 = vector.load %arg6[%c0_11, %c0_12] : memref<8x512xf32, #tpu.memory_space<vmem>>, vector<8x512xf32>
    tpu.vector_store %arg6[%c0_11, %c0_12], %12 {strides = array<i32>} : memref<8x512xf32, #tpu.memory_space<vmem>>, vector<8x512xf32>,
    return
  }
  func.func @transform_0(%arg0: i32) -> (i32, i32) {
    %c0_i32 = arith.constant 0 : i32
    %c0_i32_0 = arith.constant 0 : i32
    return %c0_i32, %arg0 : i32, i32
  }
  func.func @transform_1(%arg0: i32) -> (i32, i32) {
    %c0_i32 = arith.constant 0 : i32
    %c0_i32_0 = arith.constant 0 : i32
    %c0_i32_1 = arith.constant 0 : i32
    return %c0_i32, %c0_i32_0 : i32, i32
  }
  func.func @transform_2(%arg0: i32) -> (i32, i32) {
    %c0_i32 = arith.constant 0 : i32
    %c0_i32_0 = arith.constant 0 : i32
    %c0_i32_1 = arith.constant 0 : i32
    return %c0_i32, %c0_i32_0 : i32, i32
  }
  func.func @transform_3(%arg0: i32) -> (i32, i32) {
    %c0_i32 = arith.constant 0 : i32
    %c0_i32_0 = arith.constant 0 : i32
    %c0_i32_1 = arith.constant 0 : i32
    return %c0_i32, %c0_i32_0 : i32, i32
  }
  func.func @transform_4(%arg0: i32) -> (i32, i32) {
    %c0_i32 = arith.constant 0 : i32
    %c0_i32_0 = arith.constant 0 : i32
    %c0_i32_1 = arith.constant 0 : i32
    return %c0_i32, %c0_i32_0 : i32, i32
  }
  func.func @transform_5(%arg0: i32) -> (i32, i32) {
    %c0_i32 = arith.constant 0 : i32
    %c0_i32_0 = arith.constant 0 : i32
    return %c0_i32, %arg0 : i32, i32
  }
}

</mosaic_0001>

<bundles_post_ra>
// kernel: tpu_custom_call.1
= control target key start
LH: loop header
LB: loop body
LE: loop exit
PB: predicated region body
PF: predicated region fallthrough
CT: control target
= control target key end

     0   :  { %10 = vsyncpa [#allocation3], 0  ;;  %s510_s0 = inlined_call_operand.hbm [shape: f32[36,512], index: 0, kind: input, shape index: {}]   ;;  %s511_s1 = inlined_call_operand.vmem [shape: f32[8,36], index: 1, kind: input, shape index: {}]   ;;  %s512_s2 = inlined_call_operand.vmem [shape: f32[8,1], index: 2, kind: input, shape index: {}]   ;;  %s513_s3 = inlined_call_operand.vmem [shape: f32[8,8], index: 3, kind: input, shape index: {}]   ;;  %s514_s4 = inlined_call_operand.vmem [shape: f32[8,1], index: 4, kind: input, shape index: {}]   ;;  %s515_s5 = inlined_call_operand.hbm [shape: f32[8,512], index: 5, kind: output, shape index: {}]  }
   0x1   :  { %11 = vsyncpa [#allocation4], 0  ;;  %s456_s18 = smov [#allocation2]  }
   0x2   :  { %s17_s19 = sshll.u32 %s456_s18, 4  ;;  %s18_s19 = int_to_ptr.vmem [resolvable:$true] %s17_s19 }
   0x3   :  { %s420_s20 = scalar_lea.vmem %s18_s19, 2560  ;;  %p425_p1 = scmp.lt.s32.totalorder %s18_s19, %s18_s19 }
   0x4   :  { %p421_p0 = scmp.ne.s32.totalorder %s18_s19, %s420_s20  ;;  %p426_p2 = scmp.lt.s32.totalorder %s420_s20, %s420_s20 }
   0x6   :  { %p427_p3 = por %p426_p2, %p425_p1 }
   0x8   :  { %p428_p4 = pnand %p427_p3, %p421_p0 }
   0xa   :  { %431 = shalt.err (!%p428_p4)
}
   0xb   :  { %s457_s21 = smov 512   ;;  %s458_s22 = smov 32  }
   0xc   :  { %23 = dma.hbm_to_vmem [thread:$0]  %s510_s0, 2560, %s18_s19, [#allocation3], %s457_s21, %s457_s21, %s458_s22  }
   0xd   :  { %452 = dma.done.wait [#allocation3], 2560  }
   0xe   :  { %453 = vsyncadd [#allocation3], 4294964736  ;;  %v459_v0 = vmov 0.0   ;;  %v460_v1 = vmov 0   ;;  %vm66_vm0 = vcmask 1043456   ;;  %v49_v6 = vld [vmem:[#allocation2 + $0x68] sm:$0xff] }
   0xf   :  { %143 = vmatprep.mubr.f32.mxu0 %v459_v0  ;;  %214 = vmatprep.mubr.f32.mxu1 %v459_v0  ;;  %v53_v2 = vld [vmem:[#allocation2 + $0x88] sm:$0xf]  ;;  %v55_v3 = vld [vmem:[#allocation2 + $0x98] sm:$0xf]  ;;  %v52_v4 = vld [vmem:[#allocation2 + $0x80] sm:$0xf] }
  0x10   :  { %411 = vset.pattern.permute.xlu0 %v460_v1  ;;  %397 = vmatprep.subr.msk.mxu0 %vm66_vm0, %v53_v2  ;;  %v54_v5 = vld [vmem:[#allocation2 + $0x90] sm:$0xf]  ;;  %v51_v7 = vld [vmem:[#allocation2 + $0x78] sm:$0xff]  ;;  %v48_v8 = vld [vmem:[#allocation2 + $0x60] sm:$0xff]  ;;  %vm62_vm1 = vcmask 293888   ;;  %vm232_vm2 = vcmask 64512  }
  0x11   :  { %400 = vmatprep.subr.msk.mxu1 %vm66_vm0, %v55_v3  ;;  %398 = vmatpush1.msk.msra.mxu0 %vm66_vm0, %v52_v4  ;;  %v50_v9 = vld [vmem:[#allocation2 + $0x70] sm:$0xff]  ;;  %v45_v10 = vld [vmem:[#allocation2 + $0x48] sm:$0xff]  ;;  %v47_v11 = vld [vmem:[#allocation2 + $0x58] sm:$0xff] }
  0x12   :  { %401 = vmatpush1.msk.msra.mxu1 %vm66_vm0, %v54_v5  ;;  %103 = vmatprep.subr.mxu0 %v49_v6  ;;  %v44_v12 = vld [vmem:[#allocation2 + $0x40] sm:$0xff]  ;;  %v46_v13 = vld [vmem:[#allocation2 + $0x50] sm:$0xff]  ;;  %v41_v14 = vld [vmem:[#allocation2 + $0x28] sm:$0xff] }
  0x13   :  { %174 = vmatprep.subr.mxu1 %v51_v7  ;;  %104 = vmatpush1.msra.mxu0 %v48_v8  ;;  %v43_v15 = vld [vmem:[#allocation2 + $0x38] sm:$0xff]  ;;  %v40_v16 = vld [vmem:[#allocation2 + $0x20] sm:$0xff]  ;;  %v42_v17 = vld [vmem:[#allocation2 + $0x30] sm:$0xff] }
  0x14   :  { %175 = vmatpush1.msra.mxu1 %v50_v9  ;;  %105 = vmatprep.subr.mxu0 %v45_v10  ;;  %v37_v18 = vld [vmem:[#allocation2 + $0x8] sm:$0xff]  ;;  %v39_v19 = vld [vmem:[#allocation2 + $0x18] sm:$0xff]  ;;  %v36_v20 = vld [vmem:[#allocation2] sm:$0xff] }
  0x15   :  { %176 = vmatprep.subr.mxu1 %v47_v11  ;;  %106 = vmatpush1.msra.mxu0 %v44_v12  ;;  %v38_v21 = vld [vmem:[#allocation2 + $0x10] sm:$0xff]  ;;  %v35_v22 = vld [vmem:[%s511_s1] sm:$0xff] }
  0x16   :  { %177 = vmatpush1.msra.mxu1 %v46_v13  ;;  %107 = vmatprep.subr.mxu0 %v41_v14  ;;  %v56_v23 = vld [vmem:[%s512_s2] sm:$0xff] }
  0x17   :  { %178 = vmatprep.subr.mxu1 %v43_v15  ;;  %108 = vmatpush1.msra.mxu0 %v40_v16  ;;  %v226_v24 = vld [vmem:[%s514_s4] sm:$0xff]  ;;  %s461_s4 = smov [#allocation5]  }
  0x18   :  { %179 = vmatpush1.msra.mxu1 %v42_v17  ;;  %109 = vmatprep.subr.mxu0 %v37_v18  ;;  %v225_v38 = vld [vmem:[%s513_s3] sm:$0xff]  ;;  %s388_s30 = sshll.u32 %s461_s4, 4  ;;  %s389_s30 = int_to_ptr.vmem [resolvable:$true] %s388_s30 }
  0x19   :  { %180 = vmatprep.subr.mxu1 %v39_v19  ;;  %110 = vmatpush1.msra.mxu0 %v36_v20  ;;  %s432_s3 = scalar_lea.vmem %s389_s30, 512  ;;  %p437_p6 = scmp.lt.s32.totalorder %s389_s30, %s389_s30 }
  0x1a   :  { %181 = vmatpush1.msra.mxu1 %v38_v21  ;;  %399 = vmatmul.mubr.msk.f32.vlgmr.msra.gmra.mxu0 %vm62_vm1, %v35_v22  ;;  %p433_p5 = scmp.ne.s32.totalorder %s389_s30, %s432_s3  ;;  %p438_p7 = scmp.lt.s32.totalorder %s432_s3, %s432_s3 }
  0x1b   :  { %402 = vmatmul.mubr.msk.f32.vlgmr.msra.gmra.mxu1 %vm62_vm1, %v35_v22  ;;  %59 = vperm.xlu0 %411, %v56_v23  }
  0x1c   :  { %300 = vmatprep.mubr.f32.mxu0 %v459_v0  ;;  %371 = vmatprep.mubr.f32.mxu1 %v459_v0  ;;  %p439_p8 = por %p438_p7, %p437_p6 }
  0x1e   :  { %p440_p9 = pnand %p439_p8, %p433_p5 }
  0x1f   :  { %229 = vperm.xlu0 %411, %v226_v24  }
  0x96   :  { %v60_v27 = vpop.permute.xlu0 %59 }
  0x9a   :  { %v230_v39 = vpop.permute.xlu0 %229 }
  0xda   :  { %v145_v25 = vpop.f32.mrf.mxu0 }
  0xdb   :  { %v216_v26 = vpop.f32.mrf.mxu1  ;;  %v146_v28 = vadd.f32 %v145_v25, %v60_v27 }
  0xdc   :  { %v217_v29 = vadd.f32 %v216_v26, %v60_v27  ;;  %v147_v30 = vpop.f32.mrf.mxu0 }
  0xdd   :  { %v218_v31 = vpop.f32.mrf.mxu1  ;;  %v148_v32 = vadd.f32 %v147_v30, %v60_v27  ;;  %v221_v36 = vmax.f32 %v146_v28, 0.0 }
  0xde   :  { %v219_v33 = vadd.f32 %v218_v31, %v60_v27  ;;  %v223_v37 = vmax.f32 %v217_v29, 0.0 }
  0xdf   :  { %v222_v34 = vmax.f32 %v148_v32, 0.0 }
  0xe0   :  { %v224_v35 = vmax.f32 %v219_v33, 0.0 }
  0xe1   :  { %266 = vmatprep.subr.mxu0 %v222_v34 }
  0xe2   :  { %337 = vmatprep.subr.mxu1 %v224_v35  ;;  %267 = vmatpush1.msra.mxu0 %v221_v36 }
  0xe3   :  { %338 = vmatpush1.msra.mxu1 %v223_v37  ;;  %403 = vmatmul.mubr.msk.f32.vlgmr.msra.gmra.mxu0 %vm232_vm2, %v225_v38 }
  0xe4   :  { %404 = vmatmul.mubr.msk.f32.vlgmr.msra.gmra.mxu1 %vm232_vm2, %v225_v38 }
 0x1a3   :  { %v302_v40 = vpop.f32.mrf.mxu0 }
 0x1a4   :  { %v373_v41 = vpop.f32.mrf.mxu1  ;;  %v303_v42 = vadd.f32 %v302_v40, %v230_v39 }
 0x1a5   :  { %v374_v43 = vadd.f32 %v373_v41, %v230_v39  ;;  %v304_v44 = vpop.f32.mrf.mxu0 }
 0x1a6   :  { %v375_v45 = vpop.f32.mrf.mxu1  ;;  %378 = vst [vmem:[#allocation5] sm:$0xff] %v303_v42  ;;  %v305_v46 = vadd.f32 %v304_v44, %v230_v39 }
 0x1a7   :  { %380 = vst [vmem:[#allocation5 + $0x10] sm:$0xff] %v374_v43  ;;  %v376_v47 = vadd.f32 %v375_v45, %v230_v39 }
 0x1a8   :  { %379 = vst [vmem:[#allocation5 + $0x8] sm:$0xff] %v305_v46 }
 0x1a9   :  { %381 = vst [vmem:[#allocation5 + $0x18] sm:$0xff] %v376_v47 }
 0x1aa   :  { %443 = shalt.err (!%p440_p9)
}
 0x1ab   :  { %391 = dma.vmem_to_hbm [thread:$0]  %s389_s30, 512, %s515_s5, [#allocation4]  }
 0x1ac   :  { %454 = dma.done.wait [#allocation4], 512  }
 0x1ad   :  { %455 = vsyncadd [#allocation4], 4294966784 }
 0x1ae   :  { %395 = vsyncpa [#allocation3], 1 }
 0x1af   :  { %396 = vsyncpa [#allocation4], 1 }

</bundles_post_ra>
